<compile_context>
chip_gen: v6e
topology: v6e:2x2x1
jax: 0.10.0
libtpu: 0.0.40
codegen_flags: <defaults>
</compile_context>

<pallas_src>
import math
import functools

import jax
import jax.numpy as jnp
from jax.experimental import pallas as pl
from jax.experimental.pallas import tpu as pltpu


def _round_up(x, m):
    return ((x + m - 1) // m) * m


def _tpu_kind():
    try:
        return (jax.devices()[0].device_kind or "").lower()
    except Exception:
        return ""


def _arc_margin_kernel(flag_ref, x_ref, w_ref, inv_ref, labels_ref, o_ref,
                       *, cos_m, sin_m, th, mm, s):
    n_idx = pl.program_id(0)           # class-tile index (TN columns per tile)
    b_idx = pl.program_id(1)           # batch-tile index (innermost)
    tn = o_ref.shape[1]

    # cos_th = x @ normalize(w).T == (x @ w.T) * inv_norm   (no transpose, no
    # normalized-weight copy; MXU consumes both tiles in their storage dtype).
    acc = jax.lax.dot_general(
        x_ref[...], w_ref[...],
        dimension_numbers=(((1,), (1,)), ((), ())),
        preferred_element_type=jnp.float32)               # (TB, TN) f32
    cos_th = jnp.clip(acc * inv_ref[...], -1.0, 1.0)      # (1, TN) row bcast

    # Scalar-prefetched per-(n,b)-tile flag: 1 iff any label lands in this tile.
    has_label = flag_ref[n_idx * pl.num_programs(1) + b_idx]

    @pl.when(has_label != 0)
    def _():
        # Full margin epilogue only on tiles that actually contain a label.
        sin_th = jnp.sqrt(1.0 - cos_th * cos_th)
        cos_th_m = cos_th * cos_m - sin_th * sin_m
        # torch.where(cos_th > th, cos_th_m, cos_th - mm); the module's
        # follow-up masked assignment (cond = cos_th - th <= 0) is the same.
        cos_th_m = jnp.where(cos_th > th, cos_th_m, cos_th - mm)

        # One-hot select in tile-local coordinates: (TB,1) subtract keeps the
        # (TB,TN) iota loop-invariant (no full-tile offset add per step).
        local_label = labels_ref[...] - n_idx * tn          # (TB, 1)
        col = jax.lax.broadcasted_iota(jnp.int32, cos_th.shape, 1)
        onehot = col == local_label
        o_ref[...] = (jnp.where(onehot, cos_th_m, cos_th) * s).astype(o_ref.dtype)

    @pl.when(has_label == 0)
    def _():
        # Fast path: no label in this tile -> plain scaled cosine.
        o_ref[...] = (cos_th * s).astype(o_ref.dtype)


def arc_margin_product(inputs, weight, labels, *, s, m,
                       inv_norm=None, tb=None, tn=None,
                       out_dtype=jnp.float32, weight_buffers=2):
    """ArcMarginProduct.forward: inputs (B,K), weight (N,K), labels (B,) -> (B,N).

    Notes:
      * inputs are cast to weight.dtype so both MXU operands match (pass bf16
        inputs + weight for the fast MXU path; accumulation stays f32).
      * pass a cached `inv_norm` (shape (N,), f32 = rsqrt(sum(w^2, -1))) to
        avoid the extra full HBM read of the weight for normalization.
      * out_dtype=jnp.bfloat16 halves the dominant B*N output write.
    """
    B, K = inputs.shape
    N, K2 = weight.shape
    assert K == K2, "inputs / weight feature mismatch"

    if inputs.dtype != weight.dtype:
        inputs = inputs.astype(weight.dtype)   # deliberate: matched MXU dtypes

    # Per-class inverse L2 norm (exact f32).  F.normalize eps:
    # w / max(||w||, 1e-12) == w * rsqrt(max(||w||^2, 1e-24)).
    if inv_norm is None:
        w32 = weight.astype(jnp.float32)
        inv_norm = jax.lax.rsqrt(jnp.maximum(jnp.sum(w32 * w32, axis=1), 1e-24))
    else:
        inv_norm = inv_norm.astype(jnp.float32)

    # ---- TPU-generation-aware tile auto-sizing ----------------------------
    k_pad = _round_up(K, 128)
    itemsize = weight.dtype.itemsize
    kind = _tpu_kind()
    if "v7" in kind or "7x" in kind:
        # v7x: 64 MiB physical / 32 MiB scoped VMEM *per TensorCore*; the grid
        # is megacore-sharded across 2 TCs, so size per TC and stay <= ~44 MiB.
        w_budget, tb_cap, tn_cap, vmem_limit = 3 << 20, 256, 2048, 44 << 20
    elif any(v in kind for v in ("v4", "v5", "v6")):
        # 128 MiB physical VMEM; raise the scoped limit explicitly (v5e's
        # default is only 16 MiB, v6e's 32 MiB).
        w_budget, tb_cap, tn_cap, vmem_limit = 6 << 20, 512, 4096, 96 << 20
    else:
        w_budget, tb_cap, tn_cap, vmem_limit = 2 << 20, 256, 2048, None

    # Sublane alignment: 8 for 4-byte dtypes, 16 for bf16, 32 for 1-byte.
    min_item = min(itemsize, jnp.dtype(out_dtype).itemsize)
    row_align = max(8, 32 // max(int(min_item), 1))

    if tb is None:
        tb = min(tb_cap, _round_up(B, row_align))
    tb = min(_round_up(tb, row_align), _round_up(B, row_align))

    tn_auto = tn is None
    if tn_auto:
        tn = w_budget // (k_pad * itemsize)
        tn = max(128, min(tn_cap, (tn // 128) * 128))
    tn = _round_up(tn, 128)
    n128 = _round_up(N, 128)
    tn = min(tn, n128)
    if tn_auto:
        # Re-balance so the last class tile isn't mostly padding
        # (keeps n_pad within ~one 128-lane block of round_up(N, 128)).
        n_tiles_est = -(-n128 // tn)
        tn = _round_up(-(-n128 // n_tiles_est), 128)

    b_pad = _round_up(B, tb)
    n_pad = _round_up(N, tn)
    n_tiles = n_pad // tn
    b_tiles = b_pad // tb

    # ---- padding (skipped entirely when shapes are already aligned) -------
    def _pad(a, pads, cv=0):
        if all(p == 0 for _, p in pads):
            return a
        return jnp.pad(a, pads, constant_values=cv)

    x_p = _pad(inputs, ((0, b_pad - B), (0, k_pad - K)))
    w_p = _pad(weight, ((0, n_pad - N), (0, k_pad - K)))
    inv_p = _pad(inv_norm.reshape(1, N), ((0, 0), (0, n_pad - N)), cv=1.0)
    labels_i = jnp.reshape(labels.astype(jnp.int32), (B, 1))
    labels_p = _pad(labels_i, ((0, b_pad - B), (0, 0)), cv=-1)

    # Per-(class-tile, batch-tile) "contains a label" table (scalar prefetch).
    lbl = labels.astype(jnp.int32)
    tile_of_label = lbl // tn                                   # (B,)
    tile_of_row = jnp.arange(B, dtype=jnp.int32) // tb          # (B,)
    tile_flag = jnp.zeros((n_tiles * b_tiles,), jnp.int32)
    tile_flag = tile_flag.at[tile_of_label * b_tiles + tile_of_row].set(1)

    cos_m = math.cos(m)
    sin_m = math.sin(m)
    th = math.cos(math.pi - m)
    mm = math.sin(math.pi - m) * m

    kernel = functools.partial(_arc_margin_kernel, cos_m=cos_m, sin_m=sin_m,
                               th=th, mm=mm, s=float(s))

    # Weight tile is resident across the inner batch axis (index_map ignores b).
    if weight_buffers != 2:
        # Optional deeper buffering if the weight DMA is exposed at class-tile
        # boundaries (mostly v5e, or after enlarging tn).  Costs +1 weight tile.
        w_spec = pl.BlockSpec((tn, k_pad), lambda n, b, f: (n, 0),
                              pipeline_mode=pl.Buffered(int(weight_buffers)))
    else:
        w_spec = pl.BlockSpec((tn, k_pad), lambda n, b, f: (n, 0))

    # grid = (class tiles, batch tiles); batch innermost keeps the weight and
    # inv_norm blocks resident across b tiles.  Both axes are "parallel" (no
    # carried state) so v7x can shard class tiles across its two TensorCores.
    grid = (n_tiles, b_tiles)

    cp_kwargs = dict(dimension_semantics=("parallel", "parallel"))
    if vmem_limit is not None:
        cp_kwargs["vmem_limit_bytes"] = int(vmem_limit)

    out = pl.pallas_call(
        kernel,
        grid_spec=pltpu.PrefetchScalarGridSpec(
            num_scalar_prefetch=1,
            grid=grid,
            in_specs=[
                pl.BlockSpec((tb, k_pad), lambda n, b, f: (b, 0)),   # x
                w_spec,                                              # weight
                pl.BlockSpec((1, tn), lambda n, b, f: (0, n)),       # inv_norm
                pl.BlockSpec((tb, 1), lambda n, b, f: (b, 0)),       # labels
            ],
            out_specs=pl.BlockSpec((tb, tn), lambda n, b, f: (b, n)),
        ),
        out_shape=jax.ShapeDtypeStruct((b_pad, n_pad), out_dtype),
        compiler_params=pltpu.CompilerParams(**cp_kwargs),
    )(tile_flag, x_p, w_p, inv_p, labels_p)

    return out[:B, :N]


def _reference(inputs, weight, labels, *, s, m):
    """Pure-JAX ArcMarginProduct forward (same math as the torch module)."""
    cos_m, sin_m = math.cos(m), math.sin(m)
    th = math.cos(math.pi - m)
    mm = math.sin(math.pi - m) * m
    x = inputs.astype(jnp.float32)
    w = weight.astype(jnp.float32)
    inv_norm = jax.lax.rsqrt(jnp.maximum(jnp.sum(w * w, axis=1), 1e-24))
    logits = jax.lax.dot_general(x, w, dimension_numbers=(((1,), (1,)), ((), ())),
                                 preferred_element_type=jnp.float32)
    cos_th = jnp.clip(logits * inv_norm[None, :], -1.0, 1.0)
    sin_th = jnp.sqrt(1.0 - cos_th ** 2)
    cos_th_m = cos_th * cos_m - sin_th * sin_m
    cos_th_m = jnp.where(cos_th > th, cos_th_m, cos_th - mm)
    onehot = jax.nn.one_hot(labels, weight.shape[0], dtype=jnp.float32)
    return (onehot * cos_th_m + (1.0 - onehot) * cos_th) * s


if __name__ == "__main__":
    s_scale, margin = 30.0, 0.5

    # --- test 1: small shapes matching the module (auto tiling path) -------
    B, in_feature, out_feature = 8, 32, 16
    key = jax.random.PRNGKey(0)
    k_x, k_w, k_l = jax.random.split(key, 3)

    # Deterministic xavier_uniform_ for weight (out_feature, in_feature).
    bound = math.sqrt(6.0 / (in_feature + out_feature))
    weight = jax.random.uniform(
        k_w, (out_feature, in_feature), jnp.float32, minval=-bound, maxval=bound)
    inputs = jax.random.normal(k_x, (B, in_feature), jnp.float32)
    labels = jax.random.randint(k_l, (B,), 0, out_feature, jnp.int32)

    out = jax.block_until_ready(
        arc_margin_product(inputs, weight, labels, s=s_scale, m=margin))
    ref = _reference(inputs, weight, labels, s=s_scale, m=margin)
    assert out.shape == (B, out_feature)
    assert jnp.allclose(out, ref, atol=5e-3, rtol=5e-3)

    # --- test 2: multi-tile grid -> padding, tile-local labels, tile-skip ---
    B2, K2, N2 = 20, 200, 300
    k_x2, k_w2, k_l2 = jax.random.split(jax.random.PRNGKey(1), 3)
    w2 = jax.random.normal(k_w2, (N2, K2), jnp.float32) * 0.05
    x2 = jax.random.normal(k_x2, (B2, K2), jnp.float32)
    l2 = jax.random.randint(k_l2, (B2,), 0, N2, jnp.int32)

    out2 = jax.block_until_ready(
        arc_margin_product(x2, w2, l2, s=s_scale, m=margin, tb=16, tn=128))
    ref2 = _reference(x2, w2, l2, s=s_scale, m=margin)
    assert out2.shape == (B2, N2)
    assert jnp.allclose(out2, ref2, atol=5e-3, rtol=5e-3)

    # --- test 2b: cached inv_norm path (skips the extra weight read) -------
    inv_cached = jax.lax.rsqrt(jnp.maximum(jnp.sum(w2 * w2, axis=1), 1e-24))
    out2b = jax.block_until_ready(
        arc_margin_product(x2, w2, l2, s=s_scale, m=margin,
                           inv_norm=inv_cached, tb=16, tn=128))
    assert jnp.allclose(out2b, ref2, atol=5e-3, rtol=5e-3)

    # --- test 3: bf16 operands + bf16 output (fast MXU / halved store path) --
    x2_bf, w2_bf = x2.astype(jnp.bfloat16), w2.astype(jnp.bfloat16)
    out3 = jax.block_until_ready(
        arc_margin_product(x2_bf, w2_bf, l2, s=s_scale, m=margin,
                           tb=16, tn=128, out_dtype=jnp.bfloat16))
    # Reference on the same bf16-quantized operands (f32 math): accuracy check,
    # not just isfinite.
    ref3 = _reference(x2_bf, w2_bf, l2, s=s_scale, m=margin)
    assert out3.shape == (B2, N2)
    assert out3.dtype == jnp.bfloat16
    assert jnp.allclose(out3.astype(jnp.float32), ref3, atol=0.25, rtol=2e-2)

    print("KERNEL_OK")
</pallas_src>

<mosaic_0001>
module attributes {stable_mosaic.version = 11 : i64} {
  func.func @_arc_margin_kernel(%arg0: i32, %arg1: i32, %arg2: memref<1xi32, #tpu.memory_space<smem>>, %arg3: memref<8x128xf32, #tpu.memory_space<vmem>>, %arg4: memref<128x128xf32, #tpu.memory_space<vmem>>, %arg5: memref<1x128xf32, #tpu.memory_space<vmem>>, %arg6: memref<8x1xi32, #tpu.memory_space<vmem>>, %arg7: memref<8x128xf32, #tpu.memory_space<vmem>>) attributes {dimension_semantics = [#tpu.dimension_semantics<parallel>, #tpu.dimension_semantics<parallel>], iteration_bounds = array<i64: 1, 1>, scalar_prefetch = 1 : i64, scratch_operands = 0 : i64, tpu.core_type = #tpu.core_type<tc>, window_params = [{transform_indices = @transform_0, window_bounds = array<i64: 8, 128>}, {transform_indices = @transform_1, window_bounds = array<i64: 128, 128>}, {transform_indices = @transform_2, window_bounds = array<i64: 1, 128>}, {transform_indices = @transform_3, window_bounds = array<i64: 8, 1>}, {transform_indices = @transform_4, window_bounds = array<i64: 8, 128>}]} {
    %c0 = arith.constant 0 : index
    %c0_0 = arith.constant 0 : index
    %0 = vector.load %arg3[%c0, %c0_0] : memref<8x128xf32, #tpu.memory_space<vmem>>, vector<8x128xf32>
    %c0_1 = arith.constant 0 : index
    %c0_2 = arith.constant 0 : index
    %1 = vector.load %arg4[%c0_1, %c0_2] : memref<128x128xf32, #tpu.memory_space<vmem>>, vector<128x128xf32>
    %cst = arith.constant dense<0.000000e+00> : vector<8x128xf32>
    %2 = tpu.matmul %0, %1, %cst {dimension_numbers = #tpu.dot_dimension_numbers<[1], [1], [0], [0], [0, 0, 1, 0], [], []>} : vector<8x128xf32>, vector<128x128xf32>, vector<8x128xf32> -> vector<8x128xf32>
    %c0_3 = arith.constant 0 : index
    %c0_4 = arith.constant 0 : index
    %3 = vector.load %arg5[%c0_3, %c0_4] : memref<1x128xf32, #tpu.memory_space<vmem>>, vector<1x128xf32>
    %4 = vector.broadcast %3 : vector<1x128xf32> to vector<8x128xf32>
    %5 = arith.mulf %2, %4 : vector<8x128xf32>
    %cst_5 = arith.constant -1.000000e+00 : f32
    %cst_6 = arith.constant 1.000000e+00 : f32
    %6 = vector.broadcast %cst_5 : f32 to vector<8x128xf32>
    %7 = arith.maximumf %6, %5 : vector<8x128xf32>
    %8 = vector.broadcast %cst_6 : f32 to vector<8x128xf32>
    %9 = arith.minimumf %8, %7 : vector<8x128xf32>
    %c1_i32 = arith.constant 1 : i32
    %10 = arith.muli %arg0, %c1_i32 : i32
    %11 = arith.addi %10, %arg1 : i32
    %12 = arith.index_cast %11 : i32 to index
    %13 = memref.load %arg2[%12] : memref<1xi32, #tpu.memory_space<smem>>
    %c0_i32 = arith.constant 0 : i32
    %14 = arith.cmpi ne, %13, %c0_i32 : i32
    %15 = arith.extui %14 : i1 to i32
    %c0_i32_7 = arith.constant 0 : i32
    %16 = arith.cmpi ne, %15, %c0_i32_7 : i32
    scf.if %16 {
      %20 = arith.mulf %9, %9 : vector<8x128xf32>
      %cst_10 = arith.constant 1.000000e+00 : f32
      %21 = vector.broadcast %cst_10 : f32 to vector<8x128xf32>
      %22 = arith.subf %21, %20 : vector<8x128xf32>
      %23 = math.sqrt %22 : vector<8x128xf32>
      %cst_11 = arith.constant 0.87758255 : f32
      %24 = vector.broadcast %cst_11 : f32 to vector<8x128xf32>
      %25 = arith.mulf %9, %24 : vector<8x128xf32>
      %cst_12 = arith.constant 0.47942555 : f32
      %26 = vector.broadcast %cst_12 : f32 to vector<8x128xf32>
      %27 = arith.mulf %23, %26 : vector<8x128xf32>
      %28 = arith.subf %25, %27 : vector<8x128xf32>
      %cst_13 = arith.constant -0.87758255 : f32
      %29 = vector.broadcast %cst_13 : f32 to vector<8x128xf32>
      %30 = arith.cmpf ogt, %9, %29 : vector<8x128xf32>
      %cst_14 = arith.constant 0.239712775 : f32
      %31 = vector.broadcast %cst_14 : f32 to vector<8x128xf32>
      %32 = arith.subf %9, %31 : vector<8x128xf32>
      %33 = arith.select %30, %28, %32 : vector<8x128xi1>, vector<8x128xf32>
      %c0_15 = arith.constant 0 : index
      %c0_16 = arith.constant 0 : index
      %34 = vector.load %arg6[%c0_15, %c0_16] : memref<8x1xi32, #tpu.memory_space<vmem>>, vector<8x1xi32>
      %c128_i32 = arith.constant 128 : i32
      %35 = arith.muli %arg0, %c128_i32 : i32
      %36 = vector.broadcast %35 : i32 to vector<8x1xi32>
      %37 = arith.subi %34, %36 : vector<8x1xi32>
      %38 = tpu.iota {dimensions = array<i32: 1>} : vector<8x128xi32>
      %39 = vector.broadcast %37 : vector<8x1xi32> to vector<8x128xi32>
      %40 = arith.cmpi eq, %38, %39 : vector<8x128xi32>
      %41 = arith.select %40, %33, %9 : vector<8x128xi1>, vector<8x128xf32>
      %cst_17 = arith.constant 3.000000e+01 : f32
      %42 = vector.broadcast %cst_17 : f32 to vector<8x128xf32>
      %43 = arith.mulf %41, %42 : vector<8x128xf32>
      %c0_18 = arith.constant 0 : index
      %c0_19 = arith.constant 0 : index
      %44 = vector.load %arg7[%c0_18, %c0_19] : memref<8x128xf32, #tpu.memory_space<vmem>>, vector<8x128xf32>
      tpu.vector_store %arg7[%c0_18, %c0_19], %43 {strides = array<i32>} : memref<8x128xf32, #tpu.memory_space<vmem>>, vector<8x128xf32>,
    } else {
    }
    %c0_i32_8 = arith.constant 0 : i32
    %17 = arith.cmpi eq, %13, %c0_i32_8 : i32
    %18 = arith.extui %17 : i1 to i32
    %c0_i32_9 = arith.constant 0 : i32
    %19 = arith.cmpi ne, %18, %c0_i32_9 : i32
    scf.if %19 {
      %cst_10 = arith.constant 3.000000e+01 : f32
      %20 = vector.broadcast %cst_10 : f32 to vector<8x128xf32>
      %21 = arith.mulf %9, %20 : vector<8x128xf32>
      %c0_11 = arith.constant 0 : index
      %c0_12 = arith.constant 0 : index
      %22 = vector.load %arg7[%c0_11, %c0_12] : memref<8x128xf32, #tpu.memory_space<vmem>>, vector<8x128xf32>
      tpu.vector_store %arg7[%c0_11, %c0_12], %21 {strides = array<i32>} : memref<8x128xf32, #tpu.memory_space<vmem>>, vector<8x128xf32>,
    } else {
    }
    return
  }
  func.func @transform_0(%arg0: i32, %arg1: i32, %arg2: memref<1xi32, #tpu.memory_space<smem>>) -> (i32, i32) {
    %c0_i32 = arith.constant 0 : i32
    %c0_i32_0 = arith.constant 0 : i32
    return %arg1, %c0_i32 : i32, i32
  }
  func.func @transform_1(%arg0: i32, %arg1: i32, %arg2: memref<1xi32, #tpu.memory_space<smem>>) -> (i32, i32) {
    %c0_i32 = arith.constant 0 : i32
    %c0_i32_0 = arith.constant 0 : i32
    return %arg0, %c0_i32 : i32, i32
  }
  func.func @transform_2(%arg0: i32, %arg1: i32, %arg2: memref<1xi32, #tpu.memory_space<smem>>) -> (i32, i32) {
    %c0_i32 = arith.constant 0 : i32
    %c0_i32_0 = arith.constant 0 : i32
    return %c0_i32, %arg0 : i32, i32
  }
  func.func @transform_3(%arg0: i32, %arg1: i32, %arg2: memref<1xi32, #tpu.memory_space<smem>>) -> (i32, i32) {
    %c0_i32 = arith.constant 0 : i32
    %c0_i32_0 = arith.constant 0 : i32
    return %arg1, %c0_i32 : i32, i32
  }
  func.func @transform_4(%arg0: i32, %arg1: i32, %arg2: memref<1xi32, #tpu.memory_space<smem>>) -> (i32, i32) {
    %c0_i32 = arith.constant 0 : i32
    return %arg1, %arg0 : i32, i32
  }
}

</mosaic_0001>

<bundles_post_ra>
// kernel: tpu_custom_call.1
= control target key start
LH: loop header
LB: loop body
LE: loop exit
PB: predicated region body
PF: predicated region fallthrough
CT: control target
= control target key end

     0   :  { %11 = vsyncpa [#allocation5], 0  ;;  %s355_s0 = inlined_call_operand.<no memory space> [shape: s32[1], index: 0, kind: input, shape index: {}]   ;;  %s356_s1 = inlined_call_operand.vmem [shape: f32[8,128], index: 1, kind: input, shape index: {}]   ;;  %s357_s2 = inlined_call_operand.hbm [shape: f32[128,128], index: 2, kind: input, shape index: {}]   ;;  %s358_s3 = inlined_call_operand.vmem [shape: f32[1,128], index: 3, kind: input, shape index: {}]   ;;  %s359_s4 = inlined_call_operand.vmem [shape: s32[8,1], index: 4, kind: input, shape index: {}]   ;;  %s360_s5 = inlined_call_operand.hbm [shape: f32[8,128], index: 5, kind: output, shape index: {}]  }
   0x1   :  { %12 = vsyncpa [#allocation6], 0  ;;  %s297_s18 = smov [#allocation4]  }
   0x2   :  { %s20_s19 = sshll.u32 %s297_s18, 4  ;;  %s21_s19 = int_to_ptr.vmem [resolvable:$true] %s20_s19 }
   0x3   :  { %s261_s20 = scalar_lea.vmem %s21_s19, 2048  ;;  %p266_p1 = scmp.lt.s32.totalorder %s21_s19, %s21_s19 }
   0x4   :  { %p262_p0 = scmp.ne.s32.totalorder %s21_s19, %s261_s20  ;;  %p267_p2 = scmp.lt.s32.totalorder %s261_s20, %s261_s20 }
   0x6   :  { %p268_p3 = por %p267_p2, %p266_p1 }
   0x8   :  { %p269_p4 = pnand %p268_p3, %p262_p0 }
   0xa   :  { %272 = shalt.err (!%p269_p4)
}
   0xb   :  { %s298_s21 = smov 128   ;;  %s299_s22 = smov 8  }
   0xc   :  { %26 = dma.hbm_to_vmem [thread:$0]  %s357_s2, 2048, %s21_s19, [#allocation5], %s298_s21, %s298_s21, %s299_s22  }
   0xd   :  { %293 = dma.done.wait [#allocation5], 2048  }
   0xe   :  { %294 = vsyncadd [#allocation5], 4294965248  ;;  %v300_v0 = vmov 0.0   ;;  %vm301_vm0 = vmmov 0   ;;  %v50_v1 = vld [vmem:[#allocation4 + $0x78] sm:$0xff]  ;;  %v49_v2 = vld [vmem:[#allocation4 + $0x70] sm:$0xff] }
   0xf   :  { %208 = vmatprep.subr.mxu0 %v300_v0  ;;  %240 = vmatprep.mubr.msk.f32.mxu0 %vm301_vm0, %v300_v0  ;;  %v48_v3 = vld [vmem:[#allocation4 + $0x68] sm:$0xff]  ;;  %v47_v4 = vld [vmem:[#allocation4 + $0x60] sm:$0xff]  ;;  %v46_v5 = vld [vmem:[#allocation4 + $0x58] sm:$0xff]  ;;  %p188_p5 = scmp.eq.s32.totalorder %s355_s0, 0 }
  0x10   :  { %209 = vmatpush3.xpose.msra.mxu0 %v50_v1  ;;  %v45_v6 = vld [vmem:[#allocation4 + $0x50] sm:$0xff]  ;;  %v44_v7 = vld [vmem:[#allocation4 + $0x48] sm:$0xff]  ;;  %v43_v8 = vld [vmem:[#allocation4 + $0x40] sm:$0xff] }
  0x11   :  { %210 = vmatprep.subr.mxu0 %v300_v0  ;;  %v42_v9 = vld [vmem:[#allocation4 + $0x38] sm:$0xff]  ;;  %v41_v10 = vld [vmem:[#allocation4 + $0x30] sm:$0xff]  ;;  %v40_v11 = vld [vmem:[#allocation4 + $0x28] sm:$0xff] }
  0x12   :  { %v39_v12 = vld [vmem:[#allocation4 + $0x20] sm:$0xff]  ;;  %v38_v13 = vld [vmem:[#allocation4 + $0x18] sm:$0xff]  ;;  %v37_v14 = vld [vmem:[#allocation4 + $0x10] sm:$0xff] }
  0x13   :  { %v36_v15 = vld [vmem:[#allocation4 + $0x8] sm:$0xff]  ;;  %v35_v16 = vld [vmem:[#allocation4] sm:$0xff] }
  0x14   :  { %211 = vmatpush3.xpose.msra.mxu0 %v49_v2  ;;  %v34_v17 = vld [vmem:[%s356_s1] sm:$0xff] }
  0x15   :  { %212 = vmatprep.subr.mxu0 %v300_v0  ;;  %v186_v18 = vld [vmem:[%s358_s3] ss:$0 sm:$0xff] }
  0x18   :  { %213 = vmatpush3.xpose.msra.mxu0 %v48_v3 }
  0x19   :  { %214 = vmatprep.subr.mxu0 %v300_v0 }
  0x1c   :  { %215 = vmatpush3.xpose.msra.mxu0 %v47_v4 }
  0x1d   :  { %216 = vmatprep.subr.mxu0 %v300_v0 }
  0x20   :  { %217 = vmatpush3.xpose.msra.mxu0 %v46_v5 }
  0x21   :  { %218 = vmatprep.subr.mxu0 %v300_v0 }
  0x24   :  { %219 = vmatpush3.xpose.msra.mxu0 %v45_v6 }
  0x25   :  { %220 = vmatprep.subr.mxu0 %v300_v0 }
  0x28   :  { %221 = vmatpush3.xpose.msra.mxu0 %v44_v7 }
  0x29   :  { %222 = vmatprep.subr.mxu0 %v300_v0 }
  0x2c   :  { %223 = vmatpush3.xpose.msra.mxu0 %v43_v8 }
  0x2d   :  { %224 = vmatprep.subr.mxu0 %v300_v0 }
  0x30   :  { %225 = vmatpush3.xpose.msra.mxu0 %v42_v9 }
  0x31   :  { %226 = vmatprep.subr.mxu0 %v300_v0 }
  0x34   :  { %227 = vmatpush3.xpose.msra.mxu0 %v41_v10 }
  0x35   :  { %228 = vmatprep.subr.mxu0 %v300_v0 }
  0x38   :  { %229 = vmatpush3.xpose.msra.mxu0 %v40_v11 }
  0x39   :  { %230 = vmatprep.subr.mxu0 %v300_v0 }
  0x3c   :  { %231 = vmatpush3.xpose.msra.mxu0 %v39_v12 }
  0x3d   :  { %232 = vmatprep.subr.mxu0 %v300_v0 }
  0x40   :  { %233 = vmatpush3.xpose.msra.mxu0 %v38_v13 }
  0x41   :  { %234 = vmatprep.subr.mxu0 %v300_v0 }
  0x44   :  { %235 = vmatpush3.xpose.msra.mxu0 %v37_v14 }
  0x45   :  { %236 = vmatprep.subr.mxu0 %v300_v0 }
  0x48   :  { %237 = vmatpush3.xpose.msra.mxu0 %v36_v15 }
  0x49   :  { %238 = vmatprep.subr.mxu0 %v300_v0 }
  0x4c   :  { %239 = vmatpush3.xpose.msra.mxu0 %v35_v16 }
  0x4f   :  { %241 = vmatmul.mubr.f32.vlgmr.msra.gmra.mxu0 %v34_v17 }
 0x10e   :  { %136 = sbr.rel (%p188_p5) target bundleno = 406 (0x196), region = 25 }
 0x10f   :  { %v117_v19 = vpop.f32.mrf.mxu0 }
 0x110   :  { %v128_v20 = vmul.f32 %v186_v18, %v117_v19 }
 0x111   :  { %v242_v21 = vpop.f32.mrf.mxu0 }
 0x112   :  { %v187_v22 = vclamps-f32 %v128_v20, 1.0 }
 0x113   :  { %v152_v23 = vld [vmem:[%s359_s4] sm:$0xff]  ;;  %v302_v24 = vmov 0   ;;  %v156_v34 = vlaneseq }
 0x114   :  { %250 = vset.pattern.permute.xlu0 %v302_v24  ;;  %v137_v25 = vmul.f32 %v187_v22, %v187_v22  ;;  %v146_v32 = vmul.f32 0.87758255, %v187_v22  ;;  %v189_v36 = vadd.f32 -0.23971277, %v187_v22  ;;  %vm149_vm3 = vcmp.gt.f32.partialorder %v187_v22, -0.87758255 }
 0x115   :  { %159 = vperm.xlu0 %250, %v152_v23   ;;  %v157_v37 = vand.u32 127, %v156_v34 }
 0x116   :  { %v138_v26 = vsub.f32 1.0, %v137_v25 }
 0x118   :  { %251 = vrsqrt.f32 %v138_v26  ;;  %vm141_vm1 = vcmp.eq.f32.partialorder %v138_v26, inf  ;;  %v144_v29 = vand.u32 2147483648, %v138_v26  ;;  %vm143_vm2 = vcmp.eq.f32.partialorder %v138_v26, 0.0 }
 0x125   :  { %v252_v27 = vpop.eup %251 }
 0x126   :  { %v140_v28 = vmul.f32 %v252_v27, %v138_v26 }
 0x128   :  { %v142_v30 = vsel %vm141_vm1, %v138_v26, %v140_v28 }
 0x129   :  { %v145_v31 = vsel %vm143_vm2, %v144_v29, %v142_v30 }
 0x12a   :  { %v147_v33 = vmul.f32 0.47942555, %v145_v31 }
 0x12c   :  { %v148_v35 = vsub.f32 %v146_v32, %v147_v33 }
 0x12e   :  { %v151_v38 = vsel %vm149_vm3, %v148_v35, %v189_v36 }
 0x190   :  { %v160_v39 = vpop.permute.xlu0 %159 }
 0x191   :  { %vm161_vm4 = vcmp.eq.s32.totalorder %v157_v37, %v160_v39 }
 0x192   :  { %v162_v40 = vsel %vm161_vm4, %v151_v38, %v187_v22 }
 0x193   :  { %v163_v41 = vmul.f32 30.0, %v162_v40 }
 0x195   :  { %164 = vst [vmem:[#allocation7] sm:$0xff] %v163_v41 }
 0x196 PF:  { %p190_p6 = scmp.ne.s32.totalorder %s355_s0, 0 }
 0x198   :  { %168 = sbr.rel (%p190_p6) target bundleno = 416 (0x1a0), region = 29 }
 0x19d   :  { %v169_v42 = vmul.f32 30.0, %v187_v22 }
 0x19f   :  { %170 = vst [vmem:[#allocation7] sm:$0xff] %v169_v42 }
 0x1a0 PF:  { %s303_s4 = smov [#allocation7]  }
 0x1a1   :  { %s177_s7 = sshll.u32 %s303_s4, 4  ;;  %s178_s7 = int_to_ptr.vmem [resolvable:$true] %s177_s7 }
 0x1a2   :  { %s273_s8 = scalar_lea.vmem %s178_s7, 128  ;;  %p278_p8 = scmp.lt.s32.totalorder %s178_s7, %s178_s7 }
 0x1a3   :  { %p274_p7 = scmp.ne.s32.totalorder %s178_s7, %s273_s8  ;;  %p279_p9 = scmp.lt.s32.totalorder %s273_s8, %s273_s8 }
 0x1a5   :  { %p280_p10 = por %p279_p9, %p278_p8 }
 0x1a7   :  { %p281_p11 = pnand %p280_p10, %p274_p7 }
 0x1a9   :  { %284 = shalt.err (!%p281_p11)
}
 0x1aa   :  { %180 = dma.vmem_to_hbm [thread:$0]  %s178_s7, 128, %s360_s5, [#allocation6]  }
 0x1ab   :  { %295 = dma.done.wait [#allocation6], 128  }
 0x1ac   :  { %296 = vsyncadd [#allocation6], 4294967168 }
 0x1ad   :  { %184 = vsyncpa [#allocation5], 1 }
 0x1ae   :  { %185 = vsyncpa [#allocation6], 1 }

</bundles_post_ra>
